<compile_context>
chip_gen: v7x
topology: tpu7x:2x2x1
jax: 0.10.0
libtpu: 0.0.40
codegen_flags: <defaults>
</compile_context>

<pallas_src>
import jax
import jax.numpy as jnp
from jax.experimental import pallas as pl
from jax.experimental.pallas import tpu as pltpu


def _round_up(x, m):
    return (x + m - 1) // m * m


_NCORES = 2  # leading "parallel" grid axis; v7x has 2 TCs, harmless loop on v5e/v6e.


def _pick_tiling():
    """Generation-aware defaults: v5e/v6e have 128 MiB VMEM, v7x only 64 MiB/TC."""
    try:
        kind = jax.devices()[0].device_kind.lower()
    except Exception:  # pragma: no cover - defensive
        kind = ""
    if "v5" in kind or "v6" in kind:
        return 1024, 96 * 1024 * 1024
    return 512, 48 * 1024 * 1024  # v7x / unknown: conservative


def _conv_stats_kernel(cols_ref, w_ref, y_ref, sum_ref, sumsq_ref):
    """Pass 1: conv-as-matmul (bf16 in, f32 acc) + streaming per-core BN statistics."""
    @pl.when(pl.program_id(1) == 0)
    def _():
        sum_ref[...] = jnp.zeros_like(sum_ref)
        sumsq_ref[...] = jnp.zeros_like(sumsq_ref)

    y = jnp.dot(cols_ref[...], w_ref[...], preferred_element_type=jnp.float32)
    y_ref[...] = y.astype(y_ref.dtype)           # bf16 writeback: halves HBM traffic

    # Stats from the pre-cast f32 accumulator.  Sublane-partial sums (8, Cout_pad):
    # reshape (TM, C) -> (TM//8, 8, C) is layout-free; axis-0 sum is pure VALU adds.
    tm, cp = y.shape
    y3 = y.reshape(tm // 8, 8, cp)
    sum_ref[...] += jnp.sum(y3, axis=0)
    sumsq_ref[...] += jnp.sum(y3 * y3, axis=0)


def _bn_relu_kernel(y_ref, scale_ref, shift_ref, out_ref):
    """Pass 2: pure per-channel FMA + ReLU stream (scale/shift precomputed)."""
    y = y_ref[...].astype(jnp.float32)
    out_ref[...] = jnp.maximum(y * scale_ref[...] + shift_ref[...], 0.0
                               ).astype(out_ref.dtype)


def conv_bn_relu(x_nchw, w_oihw, gamma, beta, *, stride=1, eps=1e-5,
                 tile_m=None, out_dtype=jnp.bfloat16):
    """ConvBNReLU forward. x_nchw: (N, Cin, H, W); w_oihw: (Cout, Cin, KH, KW)."""
    N, Cin, H, W = x_nchw.shape
    Cout, Cin_w, KH, KW = w_oihw.shape
    assert Cin == Cin_w
    pad = (KH - 1) // 2

    default_tm, vmem_limit = _pick_tiling()
    if tile_m is None:
        tile_m = default_tm

    # ---- glue: NCHW -> NHWC, zero pad, im2col (bf16-early cast halves glue bytes) ----
    # TODO(synk): replace im2col with an in-kernel implicit GEMM and keep NHWC end-to-end.
    x_nhwc = jnp.transpose(x_nchw, (0, 2, 3, 1)).astype(jnp.bfloat16)
    x_pad = jnp.pad(x_nhwc, ((0, 0), (pad, pad), (pad, pad), (0, 0)))

    Ho = (H + 2 * pad - KH) // stride + 1
    Wo = (W + 2 * pad - KW) // stride + 1

    patches = []
    for kh in range(KH):
        for kw in range(KW):
            patches.append(
                x_pad[:, kh:kh + stride * Ho:stride, kw:kw + stride * Wo:stride, :])
    cols = jnp.concatenate(patches, axis=-1).reshape(N * Ho * Wo, KH * KW * Cin)

    M, K = cols.shape
    # Alignment: K (lane dim of cols / sublane dim of bf16 weights) to 128;
    # Cout to 128 (small) or 256 (v6e/v7x MXU is 2x256^2).
    K_pad = _round_up(K, 128)
    Cout_pad = _round_up(Cout, 256) if Cout > 128 else _round_up(Cout, 128)

    # M tiling: ceil-split over the core axis first so the v7x "parallel" axis really
    # halves per-core work, then tile each half by TM (multiple of 8 sublanes).
    m_per_core = -(-M // _NCORES)
    TM = min(tile_m, _round_up(m_per_core, 8))
    tiles_per_core = -(-m_per_core // TM)
    M_pad = _NCORES * tiles_per_core * TM

    # Zero padding of M / K / Cout is harmless: padded rows give y == 0 and we divide
    # by the true M; padded output rows/channels are sliced off below.
    cols_p = jnp.zeros((M_pad, K_pad), jnp.bfloat16).at[:M, :K].set(cols)

    # weights: OIHW -> (KH, KW, Cin, Cout) -> (K, Cout), matching `cols` ordering.
    w2d = jnp.transpose(w_oihw.astype(jnp.float32), (2, 3, 1, 0)).reshape(K, Cout)
    w2d_p = jnp.zeros((K_pad, Cout_pad), jnp.bfloat16).at[:K, :Cout].set(
        w2d.astype(jnp.bfloat16))

    # ---- pass 1: conv matmul + streaming per-core per-channel sum / sum-of-squares ----
    y_pad, bsum, bsumsq = pl.pallas_call(
        _conv_stats_kernel,
        out_shape=(
            jax.ShapeDtypeStruct((M_pad, Cout_pad), jnp.bfloat16),
            jax.ShapeDtypeStruct((_NCORES * 8, Cout_pad), jnp.float32),
            jax.ShapeDtypeStruct((_NCORES * 8, Cout_pad), jnp.float32),
        ),
        grid=(_NCORES, tiles_per_core),
        in_specs=[
            pl.BlockSpec((TM, K_pad), lambda c, i: (c * tiles_per_core + i, 0)),
            pl.BlockSpec((K_pad, Cout_pad), lambda c, i: (0, 0)),
        ],
        out_specs=(
            pl.BlockSpec((TM, Cout_pad), lambda c, i: (c * tiles_per_core + i, 0)),
            pl.BlockSpec((8, Cout_pad), lambda c, i: (c, 0)),
            pl.BlockSpec((8, Cout_pad), lambda c, i: (c, 0)),
        ),
        compiler_params=pltpu.CompilerParams(
            dimension_semantics=("parallel", "arbitrary"),
            vmem_limit_bytes=vmem_limit),
        cost_estimate=pl.CostEstimate(
            flops=2 * M_pad * K_pad * Cout_pad,
            transcendentals=0,
            bytes_accessed=cols_p.size * 2 + w2d_p.size * 2 + M_pad * Cout_pad * 2),
    )(cols_p, w2d_p)

    # ---- tiny epilogue math (Cout_pad-sized): fold BN into one scale/shift vector ----
    # Note: E[y^2]-E[y]^2 in f32 is cancellation-prone for |mean| >> std at huge M;
    # acceptable here, switch to shifted stats if tolerance tightens.
    inv_m = 1.0 / float(M)
    mean = jnp.sum(bsum, axis=0) * inv_m
    var = jnp.sum(bsumsq, axis=0) * inv_m - mean * mean   # biased variance (training BN)
    gamma_p = jnp.zeros((Cout_pad,), jnp.float32).at[:Cout].set(gamma.astype(jnp.float32))
    beta_p = jnp.zeros((Cout_pad,), jnp.float32).at[:Cout].set(beta.astype(jnp.float32))
    inv_std = jax.lax.rsqrt(var + jnp.float32(eps))
    scale = (gamma_p * inv_std).reshape(1, Cout_pad)
    shift = (beta_p - mean * gamma_p * inv_std).reshape(1, Cout_pad)

    # ---- pass 2: y * scale + shift, ReLU (mem-bound FMA stream, megacore parallel) ----
    alias = {0: 0} if jnp.dtype(out_dtype) == jnp.dtype(jnp.bfloat16) else {}
    out_pad = pl.pallas_call(
        _bn_relu_kernel,
        out_shape=jax.ShapeDtypeStruct((M_pad, Cout_pad), out_dtype),
        grid=(_NCORES * tiles_per_core,),
        in_specs=[
            pl.BlockSpec((TM, Cout_pad), lambda i: (i, 0)),
            pl.BlockSpec((1, Cout_pad), lambda i: (0, 0)),
            pl.BlockSpec((1, Cout_pad), lambda i: (0, 0)),
        ],
        out_specs=pl.BlockSpec((TM, Cout_pad), lambda i: (i, 0)),
        input_output_aliases=alias,       # reuse y_pad's HBM allocation when dtypes match
        compiler_params=pltpu.CompilerParams(
            dimension_semantics=("parallel",),
            vmem_limit_bytes=vmem_limit),
        cost_estimate=pl.CostEstimate(
            flops=3 * M_pad * Cout_pad,
            transcendentals=0,
            bytes_accessed=M_pad * Cout_pad * (2 + jnp.dtype(out_dtype).itemsize)),
    )(y_pad, scale, shift)

    out = out_pad[:M, :Cout].reshape(N, Ho, Wo, Cout)
    return jnp.transpose(out, (0, 3, 1, 2))


def _reference(x_nchw, w_oihw, gamma, beta, *, eps=1e-5):
    """Plain-JAX reference matching PyTorch ConvBNReLU (BN in training mode)."""
    y = jax.lax.conv_general_dilated(
        x_nchw, w_oihw, window_strides=(1, 1), padding=[(1, 1), (1, 1)],
        dimension_numbers=("NCHW", "OIHW", "NCHW"),
    )
    mean = jnp.mean(y, axis=(0, 2, 3), keepdims=True)
    var = jnp.mean((y - mean) ** 2, axis=(0, 2, 3), keepdims=True)
    y_hat = (y - mean) / jnp.sqrt(var + eps)
    out = gamma.reshape(1, -1, 1, 1) * y_hat + beta.reshape(1, -1, 1, 1)
    return jnp.maximum(out, 0.0)


if __name__ == "__main__":
    # Small deterministic setup: batch=2, in_channels=4, out_channels=8, 16x16 spatial.
    N, Cin, Cout, H, W, K = 2, 4, 8, 16, 16, 3

    key = jax.random.PRNGKey(0)
    kx, kw, kg, kb = jax.random.split(key, 4)

    x = jax.random.normal(kx, (N, Cin, H, W), dtype=jnp.float32)
    w = 0.1 * jax.random.normal(kw, (Cout, Cin, K, K), dtype=jnp.float32)
    gamma = 1.0 + 0.1 * jax.random.normal(kg, (Cout,), dtype=jnp.float32)
    beta = 0.1 * jax.random.normal(kb, (Cout,), dtype=jnp.float32)

    out = jax.block_until_ready(conv_bn_relu(x, w, gamma, beta))
    ref = jax.block_until_ready(_reference(x, w, gamma, beta))

    assert out.shape == (N, Cout, H, W)
    # bf16 MXU operands, bf16 intermediate y and bf16 output (f32 stats/epilogue math):
    # slightly looser tolerance than a pure-f32 path.
    max_err = float(jnp.max(jnp.abs(out.astype(jnp.float32) - ref)))
    assert max_err < 5e-2, f"mismatch vs reference: max_err={max_err}"

    print("KERNEL_OK")
</pallas_src>

<mosaic_0001>
module attributes {stable_mosaic.version = 11 : i64} {
  func.func @_conv_stats_kernel(%arg0: i32, %arg1: i32, %arg2: memref<256x128xbf16, #tpu.memory_space<vmem>>, %arg3: memref<128x128xbf16, #tpu.memory_space<vmem>>, %arg4: memref<256x128xbf16, #tpu.memory_space<vmem>>, %arg5: memref<8x128xf32, #tpu.memory_space<vmem>>, %arg6: memref<8x128xf32, #tpu.memory_space<vmem>>) attributes {dimension_semantics = [#tpu.dimension_semantics<parallel>, #tpu.dimension_semantics<arbitrary>], iteration_bounds = array<i64: 2, 1>, scalar_prefetch = 0 : i64, scratch_operands = 0 : i64, tpu.core_type = #tpu.core_type<tc>, window_params = [{transform_indices = @transform_0, window_bounds = array<i64: 256, 128>}, {pipeline_mode = #tpu.pipeline_mode<synchronous>, transform_indices = @transform_1, window_bounds = array<i64: 128, 128>}, {transform_indices = @transform_2, window_bounds = array<i64: 256, 128>}, {transform_indices = @transform_3, window_bounds = array<i64: 8, 128>}, {transform_indices = @transform_4, window_bounds = array<i64: 8, 128>}]} {
    %c0_i32 = arith.constant 0 : i32
    %0 = arith.cmpi eq, %arg1, %c0_i32 : i32
    %1 = arith.extui %0 : i1 to i32
    %c0_i32_0 = arith.constant 0 : i32
    %2 = arith.cmpi ne, %1, %c0_i32_0 : i32
    scf.if %2 {
      %cst_16 = arith.constant 0.000000e+00 : f32
      %18 = vector.broadcast %cst_16 : f32 to vector<8x128xf32>
      %c0_17 = arith.constant 0 : index
      %c0_18 = arith.constant 0 : index
      %19 = vector.load %arg5[%c0_17, %c0_18] : memref<8x128xf32, #tpu.memory_space<vmem>>, vector<8x128xf32>
      tpu.vector_store %arg5[%c0_17, %c0_18], %18 {strides = array<i32>} : memref<8x128xf32, #tpu.memory_space<vmem>>, vector<8x128xf32>,
      %cst_19 = arith.constant 0.000000e+00 : f32
      %20 = vector.broadcast %cst_19 : f32 to vector<8x128xf32>
      %c0_20 = arith.constant 0 : index
      %c0_21 = arith.constant 0 : index
      %21 = vector.load %arg6[%c0_20, %c0_21] : memref<8x128xf32, #tpu.memory_space<vmem>>, vector<8x128xf32>
      tpu.vector_store %arg6[%c0_20, %c0_21], %20 {strides = array<i32>} : memref<8x128xf32, #tpu.memory_space<vmem>>, vector<8x128xf32>,
    } else {
    }
    %c0 = arith.constant 0 : index
    %c0_1 = arith.constant 0 : index
    %3 = vector.load %arg2[%c0, %c0_1] : memref<256x128xbf16, #tpu.memory_space<vmem>>, vector<256x128xbf16>
    %c0_2 = arith.constant 0 : index
    %c0_3 = arith.constant 0 : index
    %4 = vector.load %arg3[%c0_2, %c0_3] : memref<128x128xbf16, #tpu.memory_space<vmem>>, vector<128x128xbf16>
    %cst = arith.constant dense<0.000000e+00> : vector<256x128xf32>
    %5 = tpu.matmul %3, %4, %cst {dimension_numbers = #tpu.dot_dimension_numbers<[1], [0], [0], [1], [0, 0, 1, 1], [], []>} : vector<256x128xbf16>, vector<128x128xbf16>, vector<256x128xf32> -> vector<256x128xf32>
    %6 = arith.truncf %5 : vector<256x128xf32> to vector<256x128xbf16>
    %c0_4 = arith.constant 0 : index
    %c0_5 = arith.constant 0 : index
    %7 = vector.load %arg4[%c0_4, %c0_5] : memref<256x128xbf16, #tpu.memory_space<vmem>>, vector<256x128xbf16>
    tpu.vector_store %arg4[%c0_4, %c0_5], %6 {strides = array<i32>} : memref<256x128xbf16, #tpu.memory_space<vmem>>, vector<256x128xbf16>,
    %8 = vector.shape_cast %5 : vector<256x128xf32> to vector<32x8x128xf32>
    %c0_6 = arith.constant 0 : index
    %c0_7 = arith.constant 0 : index
    %9 = vector.load %arg5[%c0_6, %c0_7] : memref<8x128xf32, #tpu.memory_space<vmem>>, vector<8x128xf32>
    %cst_8 = arith.constant dense<0.000000e+00> : vector<8x128xf32>
    %10 = vector.multi_reduction <add>, %8, %cst_8 [0] : vector<32x8x128xf32> to vector<8x128xf32>
    %11 = arith.addf %9, %10 : vector<8x128xf32>
    %c0_9 = arith.constant 0 : index
    %c0_10 = arith.constant 0 : index
    %12 = vector.load %arg5[%c0_9, %c0_10] : memref<8x128xf32, #tpu.memory_space<vmem>>, vector<8x128xf32>
    tpu.vector_store %arg5[%c0_9, %c0_10], %11 {strides = array<i32>} : memref<8x128xf32, #tpu.memory_space<vmem>>, vector<8x128xf32>,
    %c0_11 = arith.constant 0 : index
    %c0_12 = arith.constant 0 : index
    %13 = vector.load %arg6[%c0_11, %c0_12] : memref<8x128xf32, #tpu.memory_space<vmem>>, vector<8x128xf32>
    %14 = arith.mulf %8, %8 : vector<32x8x128xf32>
    %cst_13 = arith.constant dense<0.000000e+00> : vector<8x128xf32>
    %15 = vector.multi_reduction <add>, %14, %cst_13 [0] : vector<32x8x128xf32> to vector<8x128xf32>
    %16 = arith.addf %13, %15 : vector<8x128xf32>
    %c0_14 = arith.constant 0 : index
    %c0_15 = arith.constant 0 : index
    %17 = vector.load %arg6[%c0_14, %c0_15] : memref<8x128xf32, #tpu.memory_space<vmem>>, vector<8x128xf32>
    tpu.vector_store %arg6[%c0_14, %c0_15], %16 {strides = array<i32>} : memref<8x128xf32, #tpu.memory_space<vmem>>, vector<8x128xf32>,
    return
  }
  func.func @transform_0(%arg0: i32, %arg1: i32) -> (i32, i32) {
    %c1_i32 = arith.constant 1 : i32
    %0 = arith.muli %arg0, %c1_i32 : i32
    %1 = arith.addi %0, %arg1 : i32
    %c0_i32 = arith.constant 0 : i32
    %c0_i32_0 = arith.constant 0 : i32
    return %1, %c0_i32 : i32, i32
  }
  func.func @transform_1(%arg0: i32, %arg1: i32) -> (i32, i32) {
    %c0_i32 = arith.constant 0 : i32
    %c0_i32_0 = arith.constant 0 : i32
    %c0_i32_1 = arith.constant 0 : i32
    return %c0_i32, %c0_i32_0 : i32, i32
  }
  func.func @transform_2(%arg0: i32, %arg1: i32) -> (i32, i32) {
    %c1_i32 = arith.constant 1 : i32
    %0 = arith.muli %arg0, %c1_i32 : i32
    %1 = arith.addi %0, %arg1 : i32
    %c0_i32 = arith.constant 0 : i32
    %c0_i32_0 = arith.constant 0 : i32
    return %1, %c0_i32 : i32, i32
  }
  func.func @transform_3(%arg0: i32, %arg1: i32) -> (i32, i32) {
    %c0_i32 = arith.constant 0 : i32
    %c0_i32_0 = arith.constant 0 : i32
    return %arg0, %c0_i32 : i32, i32
  }
  func.func @transform_4(%arg0: i32, %arg1: i32) -> (i32, i32) {
    %c0_i32 = arith.constant 0 : i32
    %c0_i32_0 = arith.constant 0 : i32
    return %arg0, %c0_i32 : i32, i32
  }
}

</mosaic_0001>

<bundles_post_ra>
// kernel: tpu_custom_call.1
= control target key start
LH: loop header
LB: loop body
LE: loop exit
PB: predicated region body
PF: predicated region fallthrough
CT: control target
= control target key end

     0   :  { %10 = vsyncpa [#allocation3], 0  ;;  %s2172_s0 = inlined_call_operand.hbm [shape: bf16[512,128], index: 0, kind: input, shape index: {}]   ;;  %s2173_s1 = inlined_call_operand.hbm [shape: bf16[128,128], index: 1, kind: input, shape index: {}]   ;;  %s2174_s2 = inlined_call_operand.hbm [shape: bf16[512,128], index: 2, kind: output, shape index: {0}]   ;;  %s2175_s3 = inlined_call_operand.hbm [shape: f32[16,128], index: 3, kind: output, shape index: {1}]   ;;  %s2176_s4 = inlined_call_operand.hbm [shape: f32[16,128], index: 4, kind: output, shape index: {2}]  }
   0x1   :  { %12 = vsyncpa [#allocation3 + $0x1], 0 }
   0x2   :  { %13 = vsyncpa [#allocation6], 0 }
   0x3   :  { %14 = vsyncpa [#allocation4], 0 }
   0x4   :  { %16 = vsyncpa [#allocation4 + $0x1], 0 }
   0x5   :  { %17 = vsyncpa [#allocation9], 0 }
   0x6   :  { %19 = vsyncpa [#allocation9 + $0x1], 0  ;;  %s1743_s15 = smov 0   ;;  %s1745_s16 = smov 0  }
   0x7   :  { %s1747_s17 = smov 0   ;;  %s1749_s18 = smov 0  }
   0x8   :  { %s1751_s19 = smov 0   ;;  %s1753_s20 = smov 0  }
   0x9 LB: > { %s1774_s21 = sadd.s32 4294967295, %s1707_s20   ;;  %s2180_s22 = sadd.s32 4294967294, %s1707_s20   ;;  %s1707_s20 = sphi %s1753_s20, %s25_s20   ;;  %s1703_s19 = sphi %s1751_s19, %s2200_s19   ;;  %s1699_s18 = sphi %s1749_s18, %s2199_s18   ;;  %s1695_s17 = sphi %s1747_s17, %s2198_s17   ;;  %s1691_s16 = sphi %s1745_s16, %s2197_s16   ;;  %s1687_s15 = sphi %s1743_s15, %s2196_s15  }
   0xa   : > { %p59_p0 = scmp.ne.s32.totalorder %s1691_s16, %s1687_s15  ;;  %p2177_p1 = scmp.eq.s32.totalorder %s1774_s21, 0 }
   0xb   : > { %p112_p3 = scmp.eq.s32.totalorder %s2180_s22, 1  ;;  %p1097_p5 = scmp.ge.s32.totalorder %s1707_s20, 1 }
   0xc   : > { %p1785_p4 = por %p2177_p1, %p59_p0  ;;  %p171_p7 = scmp.lt.s32.totalorder %s1707_s20, 3 }
   0xd   : > { %p1790_p6 = por %p112_p3, %p59_p0  ;;  %s1709_s26 = smov [#allocation5]  }
   0xe   : > { %s2181_s23 = scalar_select %p1785_p4, 1, 0 }
   0xf   : > { %s2182_s24 = scalar_select %p1790_p6, 1, 0 }
  0x10   : > { %p1795_p8 = pnand %p1097_p5, %p171_p7  ;;  %s183_s27 = sshll.u32 %s1709_s26, 4  ;;  %s184_s27 = int_to_ptr.vmem [resolvable:$true] %s183_s27 }
  0x11   : > { %s37_s29 = sadd.s32 1, %s1703_s19  ;;  %s1503_s6 = scalar_lea.hbm %s2173_s1, 1024 }
  0x12   : > { %s2183_s25 = scalar_select %p1795_p8, 1, 0 }
  0x13   : > { %p1403_p9 = pneg %p1795_p8  ;;  %p1504_p12 = scmp.ne.s32.totalorder %s2173_s1, %s1503_s6 }
  0x14   : > { %p1510_p5 = scmp.lt.u32.totalorder %s1503_s6, %s2173_s1 }
  0x15   : > { %p1804_p11 = pnand %p1403_p9, %p2177_p1 }
  0x17   : > { %p1505_p13 = pneg %p1804_p11 }
  0x19   : > { %p1506_p0 = pnand %p1505_p13, %p1504_p12 }
  0x1b   : > { %p1507_p3 = pneg %p1506_p0 }
  0x1d   : > { %p1512_p7 = pnand %p1510_p5, %p1507_p3 }
  0x1f   : > { %1515 = shalt.err (!%p1512_p7)
}
  0x20   : > { %s1516_s11 = scalar_lea.vmem %s184_s27, 1024  ;;  %p1524_p2 = scmp.lt.s32.totalorder %s184_s27, %s184_s27 }
  0x21   : > { %p1517_p9 = scmp.ne.s32.totalorder %s184_s27, %s1516_s11  ;;  %p1525_p6 = scmp.lt.s32.totalorder %s1516_s11, %s1516_s11 }
  0x23   : > { %p1519_p10 = pnand %p1517_p9, %p1505_p13  ;;  %p1526_p4 = por %p1525_p6, %p1524_p2 }
  0x25   : > { %p1520_p1 = pneg %p1519_p10 }
  0x27   : > { %p1527_p8 = pnand %p1526_p4, %p1520_p1 }
  0x29   : > { %1530 = shalt.err (!%p1527_p8)
}
  0x2a   : > { %s1710_s12 = smov 64   ;;  %s1711_s13 = smov 4  }
  0x2b   : > { %1406 = dma.hbm_to_vmem [thread:$0]  (!%p1804_p11), %s2173_s1, 1024, %s184_s27, [#allocation6], %s1710_s12, %s1710_s12, %s1711_s13  }
  0x2c   : > { %p39_p1 = scmp.ge.s32.totalorder %s37_s29, 2  ;;  %s46_s30 = sadd.s32 1, %s1695_s17 }
  0x2d   : > { %p53_p2 = scmp.ne.s32.totalorder %s1695_s17, %s1691_s16  ;;  %p54_p4 = scmp.eq.s32.totalorder %s1707_s20, 0 }
  0x2e   : > { %s2202_s29 = smov (%p39_p1, %s37_s29), 0  ;;  %p2186_p8 = scmp.eq.s32.totalorder %s1774_s21, 1 }
  0x2f   : > { %p1834_p6 = por %p54_p4, %p53_p2  ;;  %s43_s6 = ssub.s32 %s1703_s19, %s2202_s29 }
  0x30   : > { %p1840_p10 = por %p2186_p8, %p53_p2  ;;  %p1422_p12 = scmp.lt.s32.totalorder %s1707_s20, 2 }
  0x31   : > { %p44_p11 = scmp.eq.s32.totalorder %s43_s6, 0  ;;  %s197_s27 = sand.u32 1, %s1695_s17  }
  0x32   : > { %s1100_s7 = sshll.u32 %s197_s27, 7  ;;  %s1174_s9 = sshll.u32 %s1703_s19, 11 }
  0x33   : > { %s1849_s8 = scalar_select %p44_p11, %s1695_s17, %s46_s30  }
  0x34   : > { %s1855_s14 = scalar_lea.hbm %s2172_s0, %s1174_s9  ;;  %s201_s26 = scalar_lea.vmem [#allocation2], %s1100_s7 }
  0x35   : > { %s209_s22 = sshll.u32 %s201_s26, 4  ;;  %p1861_p13 = pnand %p1422_p12, %p1834_p6  ;;  %s1857_s22 = int_to_ptr.vmem [resolvable:$true] %s209_s22 }
  0x36   : > { %s1865_s30 = scalar_lea.sflag [#allocation3], %s197_s27  ;;  %s1531_s10 = scalar_lea.hbm %s1855_s14, 2048 }
  0x37   : > { %p1532_p0 = scmp.ne.s32.totalorder %s1855_s14, %s1531_s10  ;;  %p1533_p3 = pneg %p1861_p13 }
  0x38   : > { %s1536_s5 = scalar_lea.hbm %s2172_s0, 4096  ;;  %p1537_p9 = scmp.lt.u32.totalorder %s1855_s14, %s2172_s0 }
  0x39   : > { %p1534_p5 = pnand %p1533_p3, %p1532_p0  ;;  %p1538_p1 = scmp.lt.u32.totalorder %s1536_s5, %s1531_s10 }
  0x3a   : > { %p1540_p4 = scmp.lt.u32.totalorder %s1531_s10, %s1855_s14 }
  0x3b   : > { %p1535_p7 = pneg %p1534_p5  ;;  %p1539_p2 = por %p1538_p1, %p1537_p9 }
  0x3d   : > { %p1541_p6 = por %p1540_p4, %p1539_p2 }
  0x3f   : > { %p1542_p8 = pnand %p1541_p6, %p1535_p7 }
  0x41   : > { %1545 = shalt.err (!%p1542_p8)
}
  0x42   : > { %s1546_s27 = scalar_lea.vmem %s1857_s22, 2048  ;;  %s1712_s7 = smov [#allocation2]  }
  0x43   : > { %p1547_p12 = scmp.ne.s32.totalorder %s1857_s22, %s1546_s27  ;;  %s1551_s9 = sshll.u32 %s1712_s7, 4  ;;  %s1552_s9 = int_to_ptr.vmem [resolvable:$false] %s1551_s9 }
  0x44   : > { %s1553_s11 = scalar_lea.vmem %s1552_s9, 4096  ;;  %p1554_p5 = scmp.lt.s32.totalorder %s1857_s22, %s1552_s9 }
  0x45   : > { %p1549_p11 = pnand %p1547_p12, %p1533_p3  ;;  %p1555_p9 = scmp.lt.s32.totalorder %s1553_s11, %s1546_s27 }
  0x47   : > { %p1550_p0 = pneg %p1549_p11  ;;  %p1556_p1 = por %p1555_p9, %p1554_p5 }
  0x49   : > { %p1557_p2 = pnand %p1556_p1, %p1550_p0 }
  0x4b   : > { %1560 = shalt.err (!%p1557_p2)
}
  0x4c   : > { %1410 = dma.hbm_to_vmem [thread:$0]  (!%p1861_p13), %s1855_s14, 2048, %s1857_s22, %s1865_s30, %s1710_s12, %s1710_s12, %s1711_s13  }
  0x4d   : > { %p2189_p3 = scmp.ne.s32.totalorder %s2183_s25, 0 }
  0x4e   : > { %s1899_s10 = sand.u32 (!%p2189_p3), 1, %s1691_s16   ;;  %p2190_p7 = scmp.ne.s32.totalorder (!%p2189_p3), %s2181_s23, 0 }
  0x4f   : > { %221 = sbr.rel (%p2189_p3) target bundleno = 447 (0x1bf), region = 28  ;;  %s1104_s5 = sshll.u32 (!%p2189_p3), %s1899_s10, 7 }
  0x50   : > { %s224_s26 = scalar_lea.sflag (!%p2189_p3), [#allocation3], %s1899_s10  ;;  %s1905_s6 = scalar_lea.vmem (!%p2189_p3), [#allocation2], %s1104_s5 }
  0x56   : > { %1670 = dma.done.wait (%p2190_p7), %s224_s26, 2048  }
  0x57   : > { %1672 = vsyncadd (%p2190_p7), %s224_s26, 4294965248  ;;  %p2191_p13 = scmp.eq.s32.totalorder %s1774_s21, 0 }
  0x59   : > { %1674 = dma.done.wait (%p2191_p13), [#allocation6], 1024   ;;  %p2192_p4 = pmov %p2191_p13 }
  0x5a   : > { %v1479_v0 = vld [vmem:[#allocation5] sm:$0xff]   ;;  %v1480_v1 = vld [vmem:[#allocation5 + $0x8] sm:$0xff]   ;;  %v1481_v2 = vld [vmem:[#allocation5 + $0x10] sm:$0xff]   ;;  %s1945_s22 = scalar_lea.vmem [#allocation7], %s1104_s5  ;;  %s1207_s23 = sshll.u32 %s1699_s18, 11 }
  0x5b   : > { %1676 = vsyncadd (%p2192_p4), [#allocation6], 4294966272  ;;  %1327 = vmatprep.subr.bf16.mxu0 %v1479_v0  ;;  %1375 = vmatprep.subr.bf16.mxu1 %v1479_v0  ;;  %v1482_v3 = vld [vmem:[#allocation5 + $0x18] sm:$0xff]   ;;  %v1487_v4 = vld [vmem:[%s1905_s6] sm:$0xff]   ;;  %s915_s25 = sshll.u32 %s1945_s22, 4  ;;  %s1998_s14 = scalar_lea.hbm %s2174_s2, %s1207_s23  ;;  %s2000_s25 = int_to_ptr.vmem [resolvable:$true] %s915_s25 }
  0x5c   : > { %1328 = vmatpush3.bf16.msra.mxu0 %v1479_v0  ;;  %1383 = vmatpush3.bf16.msra.mxu1 %v1479_v0  ;;  %v1483_v5 = vld [vmem:[#allocation5 + $0x20] sm:$0xff]   ;;  %v1484_v6 = vld [vmem:[#allocation5 + $0x28] sm:$0xff]   ;;  %v1485_v8 = vld [vmem:[#allocation5 + $0x30] sm:$0xff]   ;;  %s891_s30 = scalar_lea.sflag [#allocation4], %s1899_s10  ;;  %s1561_s27 = scalar_lea.vmem %s2000_s25, 2048 }
  0x5d   : > { %1329 = vmatprep.subr.bf16.mxu0 %v1480_v1  ;;  %1376 = vmatprep.subr.bf16.mxu1 %v1480_v1  ;;  %v1495_v7 = vld [vmem:[%s1905_s6 + $0x40] sm:$0xff]   ;;  %v1486_v9 = vld [vmem:[#allocation5 + $0x38] sm:$0xff]   ;;  %v1488_v10 = vld [vmem:[%s1905_s6 + $0x8] sm:$0xff]   ;;  %p1562_p6 = scmp.ne.s32.totalorder %s2000_s25, %s1561_s27  ;;  %s1713_s7 = smov [#allocation7]  }
  0x5e   : > { %1343 = vmatprep.mubr.bf16.mxu0 %v1487_v4  ;;  %1359 = vmatprep.mubr.bf16.mxu1 %v1495_v7  ;;  %v1496_v11 = vld [vmem:[%s1905_s6 + $0x48] sm:$0xff]   ;;  %v1489_v12 = vld [vmem:[%s1905_s6 + $0x10] sm:$0xff]   ;;  %v1490_v14 = vld [vmem:[%s1905_s6 + $0x18] sm:$0xff]   ;;  %s1565_s9 = sshll.u32 %s1713_s7, 4  ;;  %s1566_s9 = int_to_ptr.vmem [resolvable:$false] %s1565_s9 }
  0x5f   : > { %v1497_v13 = vld [vmem:[%s1905_s6 + $0x50] sm:$0xff]   ;;  %v1498_v15 = vld [vmem:[%s1905_s6 + $0x58] sm:$0xff]   ;;  %v1491_v16 = vld [vmem:[%s1905_s6 + $0x20] sm:$0xff]   ;;  %p1563_p8 = pnand %p1562_p6, %p1840_p10  ;;  %s1567_s11 = scalar_lea.vmem %s1566_s9, 4096 }
  0x60   : > { %1330 = vmatpush3.bf16.msra.mxu0 %v1480_v1  ;;  %1384 = vmatpush3.bf16.msra.mxu1 %v1480_v1  ;;  %v1499_v17 = vld [vmem:[%s1905_s6 + $0x60] sm:$0xff]   ;;  %v1492_v18 = vld [vmem:[%s1905_s6 + $0x28] sm:$0xff]   ;;  %v1493_v20 = vld [vmem:[%s1905_s6 + $0x30] sm:$0xff]   ;;  %p1568_p11 = scmp.lt.s32.totalorder %s2000_s25, %s1566_s9  ;;  %p1569_p0 = scmp.lt.s32.totalorder %s1567_s11, %s1561_s27 }
  0x61   : > { %1331 = vmatprep.subr.bf16.mxu0 %v1481_v2  ;;  %1377 = vmatprep.subr.bf16.mxu1 %v1481_v2  ;;  %v1500_v19 = vld [vmem:[%s1905_s6 + $0x68] sm:$0xff]   ;;  %v1501_v21 = vld [vmem:[%s1905_s6 + $0x70] sm:$0xff]   ;;  %v1494_v22 = vld [vmem:[%s1905_s6 + $0x38] sm:$0xff]   ;;  %p1564_p12 = pneg %p1563_p8 }
  0x62   : > { %v1502_v23 = vld [vmem:[%s1905_s6 + $0x78] sm:$0xff]   ;;  %p1570_p5 = por %p1569_p0, %p1568_p11 }
  0x64   : > { %1332 = vmatpush3.bf16.msra.mxu0 %v1481_v2  ;;  %1385 = vmatpush3.bf16.msra.mxu1 %v1481_v2  ;;  %p1571_p9 = pnand %p1570_p5, %p1564_p12 }
  0x65   : > { %1333 = vmatprep.subr.bf16.mxu0 %v1482_v3  ;;  %1378 = vmatprep.subr.bf16.mxu1 %v1482_v3 }
  0x68   : > { %1334 = vmatpush3.bf16.msra.mxu0 %v1482_v3  ;;  %1386 = vmatpush3.bf16.msra.mxu1 %v1482_v3 }
  0x69   : > { %1335 = vmatprep.subr.bf16.mxu0 %v1483_v5  ;;  %1379 = vmatprep.subr.bf16.mxu1 %v1483_v5 }
  0x6c   : > { %1336 = vmatpush3.bf16.msra.mxu0 %v1483_v5  ;;  %1387 = vmatpush3.bf16.msra.mxu1 %v1483_v5 }
  0x6d   : > { %1337 = vmatprep.subr.bf16.mxu0 %v1484_v6  ;;  %1380 = vmatprep.subr.bf16.mxu1 %v1484_v6 }
  0x70   : > { %1338 = vmatpush3.bf16.msra.mxu0 %v1484_v6  ;;  %1388 = vmatpush3.bf16.msra.mxu1 %v1484_v6 }
  0x71   : > { %1339 = vmatprep.subr.bf16.mxu0 %v1485_v8  ;;  %1381 = vmatprep.subr.bf16.mxu1 %v1485_v8 }
  0x74   : > { %1340 = vmatpush3.bf16.msra.mxu0 %v1485_v8  ;;  %1389 = vmatpush3.bf16.msra.mxu1 %v1485_v8 }
  0x75   : > { %1341 = vmatprep.subr.bf16.mxu0 %v1486_v9  ;;  %1382 = vmatprep.subr.bf16.mxu1 %v1486_v9 }
  0x78   : > { %1342 = vmatpush3.bf16.msra.mxu0 %v1486_v9  ;;  %1390 = vmatpush3.bf16.msra.mxu1 %v1486_v9 }
  0x7b   : > { %1344 = vmatmul.mubr.bf16.vlgmr.msra.gmra.mrb[0].mxu0 %v1488_v10  ;;  %1360 = vmatmul.mubr.bf16.vlgmr.msra.gmra.mrb[0].mxu1 %v1496_v11 }
  0x7c   : > { %1347 = vmatprep.mubr.bf16.mxu0 %v1489_v12  ;;  %1363 = vmatprep.mubr.bf16.mxu1 %v1497_v13 }
  0x83   : > { %1348 = vmatmul.mubr.bf16.gmra.mrb[4].mxu0 %v1490_v14  ;;  %1364 = vmatmul.mubr.bf16.gmra.mrb[4].mxu1 %v1498_v15 }
  0x84   : > { %1351 = vmatprep.mubr.bf16.mxu0 %v1491_v16  ;;  %1367 = vmatprep.mubr.bf16.mxu1 %v1499_v17 }
  0x8b   : > { %1352 = vmatmul.mubr.bf16.gmra.mrb[8].mxu0 %v1492_v18  ;;  %1368 = vmatmul.mubr.bf16.gmra.mrb[8].mxu1 %v1500_v19 }
  0x8c   : > { %1355 = vmatprep.mubr.bf16.mxu0 %v1493_v20  ;;  %1371 = vmatprep.mubr.bf16.mxu1 %v1501_v21 }
  0x93   : > { %1356 = vmatmul.mubr.bf16.gmra.mrb[12].mxu0 %v1494_v22  ;;  %1372 = vmatmul.mubr.bf16.gmra.mrb[12].mxu1 %v1502_v23 }
 0x14e   : > { %v1345_v24 = vpop.f32.mrb[0].mxu0  ;;  %v1931_v25 = vpop.f32.mrb[0].mxu1 }
 0x14f   : > { %v503_v26 = vpop.f32.mrb[1].mxu0  ;;  %v1933_v27 = vpop.f32.mrb[1].mxu1  ;;  %v827_v39 = vmul.f32 %v1345_v24, %v1345_v24 }
 0x150   : > { %v1346_v28 = vpop.f32.mrb[2].mxu0  ;;  %v1935_v29 = vpop.f32.mrb[2].mxu1  ;;  %v825_v30 = vmul.f32 %v503_v26, %v503_v26 }
 0x151   : > { %v1216_v31 = vpack.c.bf16 %v1346_v28, %v1345_v24  ;;  %v506_v32 = vpop.f32.mrb[3].mxu0  ;;  %v1256_v33 = vpack.c.bf16 %v1935_v29, %v1931_v25  ;;  %v1939_v34 = vpop.f32.mrb[3].mxu1  ;;  %v828_v42 = vmul.f32 %v1346_v28, %v1346_v28 }
 0x152   : > { %v1211_v35 = vpack.c.bf16 %v506_v32, %v503_v26  ;;  %v791_v36 = vadd.f32 %v506_v32, %v503_v26  ;;  %v826_v37 = vmul.f32 %v506_v32, %v506_v32  ;;  %v1251_v38 = vpack.c.bf16 %v1939_v34, %v1933_v27 }
 0x153   : > { %1288 = vst [vmem:[%s1945_s22 + $0x8] sm:$0xff] %v1216_v31   ;;  %1296 = vst [vmem:[%s1945_s22 + $0x48] sm:$0xff] %v1256_v33  }
 0x154   : > { %1212 = vst [vmem:[%s1945_s22] sm:$0xff] %v1211_v35   ;;  %v792_v40 = vadd.f32 %v1345_v24, %v791_v36  ;;  %v857_v41 = vadd.f32 %v826_v37, %v825_v30  ;;  %1295 = vst [vmem:[%s1945_s22 + $0x40] sm:$0xff] %v1251_v38  }
 0x156   : > { %v858_v43 = vadd.f32 %v857_v41, %v827_v39  ;;  %v1349_v44 = vpop.f32.mrb[4].mxu0  ;;  %v793_v45 = vadd.f32 %v1346_v28, %v792_v40  ;;  %v1951_v46 = vpop.f32.mrb[4].mxu1 }
 0x157   : > { %v519_v47 = vpop.f32.mrb[5].mxu0  ;;  %v1953_v48 = vpop.f32.mrb[5].mxu1  ;;  %v831_v63 = vmul.f32 %v1349_v44, %v1349_v44 }
 0x158   : > { %v794_v49 = vadd.f32 %v793_v45, %v519_v47  ;;  %v829_v50 = vmul.f32 %v519_v47, %v519_v47  ;;  %v859_v51 = vadd.f32 %v858_v43, %v828_v42  ;;  %v1350_v52 = vpop.f32.mrb[6].mxu0  ;;  %v1955_v53 = vpop.f32.mrb[6].mxu1 }
 0x159   : > { %v1226_v54 = vpack.c.bf16 %v1350_v52, %v1349_v44  ;;  %v522_v55 = vpop.f32.mrb[7].mxu0  ;;  %v1266_v56 = vpack.c.bf16 %v1955_v53, %v1951_v46  ;;  %v1959_v57 = vpop.f32.mrb[7].mxu1  ;;  %v832_v2 = vmul.f32 %v1350_v52, %v1350_v52 }
 0x15a   : > { %v860_v58 = vadd.f32 %v859_v51, %v829_v50  ;;  %v1221_v59 = vpack.c.bf16 %v522_v55, %v519_v47  ;;  %v795_v60 = vadd.f32 %v794_v49, %v522_v55  ;;  %v830_v61 = vmul.f32 %v522_v55, %v522_v55 }
 0x15b   : > { %1290 = vst [vmem:[%s1945_s22 + $0x18] sm:$0xff] %v1226_v54   ;;  %1298 = vst [vmem:[%s1945_s22 + $0x58] sm:$0xff] %v1266_v56   ;;  %v1261_v62 = vpack.c.bf16 %v1959_v57, %v1953_v48 }
 0x15c   : > { %1289 = vst [vmem:[%s1945_s22 + $0x10] sm:$0xff] %v1221_v59   ;;  %v796_v0 = vadd.f32 %v1349_v44, %v795_v60  ;;  %v861_v1 = vadd.f32 %v860_v58, %v830_v61  ;;  %v841_v61 = vmul.f32 %v1933_v27, %v1933_v27 }
 0x15d   : > { %1297 = vst [vmem:[%s1945_s22 + $0x50] sm:$0xff] %v1261_v62  }
 0x15e   : > { %v862_v3 = vadd.f32 %v861_v1, %v831_v63  ;;  %v1353_v4 = vpop.f32.mrb[8].mxu0  ;;  %v797_v5 = vadd.f32 %v1350_v52, %v796_v0  ;;  %v1967_v6 = vpop.f32.mrb[8].mxu1 }
 0x15f   : > { %v535_v7 = vpop.f32.mrb[9].mxu0  ;;  %v1969_v8 = vpop.f32.mrb[9].mxu1  ;;  %v835_v23 = vmul.f32 %v1353_v4, %v1353_v4 }
 0x160   : > { %v798_v9 = vadd.f32 %v797_v5, %v535_v7  ;;  %v833_v10 = vmul.f32 %v535_v7, %v535_v7  ;;  %v863_v11 = vadd.f32 %v862_v3, %v832_v2  ;;  %v1354_v12 = vpop.f32.mrb[10].mxu0  ;;  %v1971_v13 = vpop.f32.mrb[10].mxu1 }
 0x161   : > { %v1236_v14 = vpack.c.bf16 %v1354_v12, %v1353_v4  ;;  %v538_v15 = vpop.f32.mrb[11].mxu0  ;;  %v1276_v16 = vpack.c.bf16 %v1971_v13, %v1967_v6  ;;  %v1975_v17 = vpop.f32.mrb[11].mxu1  ;;  %v836_v28 = vmul.f32 %v1354_v12, %v1354_v12 }
 0x162   : > { %v864_v18 = vadd.f32 %v863_v11, %v833_v10  ;;  %v1231_v19 = vpack.c.bf16 %v538_v15, %v535_v7  ;;  %v799_v20 = vadd.f32 %v798_v9, %v538_v15  ;;  %v834_v21 = vmul.f32 %v538_v15, %v538_v15 }
 0x163   : > { %1292 = vst [vmem:[%s1945_s22 + $0x28] sm:$0xff] %v1236_v14   ;;  %1300 = vst [vmem:[%s1945_s22 + $0x68] sm:$0xff] %v1276_v16   ;;  %v1271_v22 = vpack.c.bf16 %v1975_v17, %v1969_v8 }
 0x164   : > { %1291 = vst [vmem:[%s1945_s22 + $0x20] sm:$0xff] %v1231_v19   ;;  %v800_v24 = vadd.f32 %v1353_v4, %v799_v20  ;;  %v865_v26 = vadd.f32 %v864_v18, %v834_v21 }
 0x165   : > { %1299 = vst [vmem:[%s1945_s22 + $0x60] sm:$0xff] %v1271_v22  }
 0x166   : > { %v866_v30 = vadd.f32 %v865_v26, %v835_v23  ;;  %v1357_v31 = vpop.f32.mrb[12].mxu0  ;;  %v801_v32 = vadd.f32 %v1354_v12, %v800_v24  ;;  %v1983_v33 = vpop.f32.mrb[12].mxu1 }
 0x167   : > { %v551_v35 = vpop.f32.mrb[13].mxu0  ;;  %v1985_v36 = vpop.f32.mrb[13].mxu1  ;;  %v839_v54 = vmul.f32 %v1357_v31, %v1357_v31 }
 0x168   : > { %v802_v37 = vadd.f32 %v801_v32, %v551_v35  ;;  %v837_v38 = vmul.f32 %v551_v35, %v551_v35  ;;  %v867_v39 = vadd.f32 %v866_v30, %v836_v28  ;;  %v1358_v40 = vpop.f32.mrb[14].mxu0  ;;  %v1989_v41 = vpop.f32.mrb[14].mxu1 }
 0x169   : > { %v1246_v42 = vpack.c.bf16 %v1358_v40, %v1357_v31  ;;  %v554_v43 = vpop.f32.mrb[15].mxu0  ;;  %v1286_v44 = vpack.c.bf16 %v1989_v41, %v1983_v33  ;;  %v1993_v45 = vpop.f32.mrb[15].mxu1  ;;  %v840_v58 = vmul.f32 %v1358_v40, %v1358_v40 }
 0x16a   : > { %v868_v47 = vadd.f32 %v867_v39, %v837_v38  ;;  %v1241_v49 = vpack.c.bf16 %v554_v43, %v551_v35  ;;  %v803_v50 = vadd.f32 %v802_v37, %v554_v43  ;;  %v838_v51 = vmul.f32 %v554_v43, %v554_v43 }
 0x16b   : > { %1294 = vst [vmem:[%s1945_s22 + $0x38] sm:$0xff] %v1246_v42   ;;  %1302 = vst [vmem:[%s1945_s22 + $0x78] sm:$0xff] %v1286_v44   ;;  %v1281_v52 = vpack.c.bf16 %v1993_v45, %v1985_v36 }
 0x16c   : > { %1293 = vst [vmem:[%s1945_s22 + $0x30] sm:$0xff] %v1241_v49   ;;  %v804_v55 = vadd.f32 %v1357_v31, %v803_v50  ;;  %v869_v56 = vadd.f32 %v868_v47, %v838_v51 }
 0x16d   : > { %1301 = vst [vmem:[%s1945_s22 + $0x70] sm:$0xff] %v1281_v52  }
 0x16e   : > { %v870_v59 = vadd.f32 %v869_v56, %v839_v54  ;;  %v805_v60 = vadd.f32 %v1358_v40, %v804_v55 }
 0x16f   : > { %1574 = shalt.err (!%p1571_p9)
}
 0x170   : > { %s1575_s5 = scalar_lea.hbm %s1998_s14, 2048  ;;  %s1579_s22 = scalar_lea.hbm %s2174_s2, 4096 }
 0x171   : > { %p1576_p1 = scmp.ne.s32.totalorder %s1998_s14, %s1575_s5  ;;  %p1580_p7 = scmp.lt.u32.totalorder %s1998_s14, %s2174_s2 }
 0x172   : > { %p1581_p13 = scmp.lt.u32.totalorder %s1579_s22, %s1575_s5  ;;  %p1583_p6 = scmp.lt.u32.totalorder %s1575_s5, %s1998_s14 }
 0x173   : > { %p1577_p2 = pnand %p1576_p1, %p1840_p10 }
 0x174   : > { %p1582_p4 = por %p1581_p13, %p1580_p7 }
 0x175   : > { %p1578_p3 = pneg %p1577_p2 }
 0x176   : > { %p1584_p8 = por %p1583_p6, %p1582_p4 }
 0x178   : > { %p1585_p12 = pnand %p1584_p8, %p1578_p3 }
 0x17a   : > { %1588 = shalt.err (!%p1585_p12)
}
 0x17b   : > { %s1714_s13 = smov 64   ;;  %s1715_s27 = smov 4   ;;  %v806_v62 = vadd.f32 %v805_v60, %v1933_v27  ;;  %v871_v63 = vadd.f32 %v870_v59, %v840_v58  ;;  %v842_v2 = vmul.f32 %v1939_v34, %v1939_v34  ;;  %v843_v3 = vmul.f32 %v1931_v25, %v1931_v25 }
 0x17c   : > { %1397 = dma.vmem_to_hbm [thread:$0]  (%p1840_p10), %s2000_s25, 2048, %s1998_s14, %s891_s30, %s1714_s13, %s1714_s13, %s1715_s27   ;;  %v844_v7 = vmul.f32 %v1935_v29, %v1935_v29  ;;  %v845_v27 = vmul.f32 %v1953_v48, %v1953_v48  ;;  %v846_v15 = vmul.f32 %v1959_v57, %v1959_v57  ;;  %v849_v20 = vmul.f32 %v1969_v8, %v1969_v8 }
 0x17d   : > { %v872_v0 = vadd.f32 %v871_v63, %v841_v61  ;;  %v807_v1 = vadd.f32 %v806_v62, %v1939_v34  ;;  %v851_v24 = vmul.f32 %v1967_v6, %v1967_v6  ;;  %v852_v28 = vmul.f32 %v1971_v13, %v1971_v13  ;;  %s1107_s25 = sshll.u32 %s1899_s10, 3  ;;  %s895_s14 = sand.u32 1, %s1774_s21  }
 0x17e   : > { %v853_v31 = vmul.f32 %v1985_v36, %v1985_v36  ;;  %v855_v38 = vmul.f32 %v1983_v33, %v1983_v33  ;;  %s1170_s30 = sshll.u32 %s1699_s18, 7  ;;  %s258_s7 = scalar_lea.vmem [#allocation8], %s1107_s25 }
 0x17f   : > { %v808_v4 = vadd.f32 %v1931_v25, %v807_v1  ;;  %v873_v5 = vadd.f32 %v872_v0, %v842_v2  ;;  %v847_v25 = vmul.f32 %v1951_v46, %v1951_v46  ;;  %s931_s10 = sshll.u32 %s258_s7, 4  ;;  %s2083_s9 = scalar_lea.vmem [#allocation10], %s1107_s25  ;;  %s2091_s10 = int_to_ptr.vmem [resolvable:$true] %s931_s10 }
 0x180   : > { %s944_s11 = sshll.u32 %s2083_s9, 4  ;;  %s2089_s6 = scalar_lea.hbm %s2175_s3, %s1170_s30  ;;  %s2098_s11 = int_to_ptr.vmem [resolvable:$true] %s944_s11 }
 0x181   : > { %v874_v9 = vadd.f32 %v873_v5, %v843_v3  ;;  %v809_v10 = vadd.f32 %v1935_v29, %v808_v4  ;;  %v848_v29 = vmul.f32 %v1955_v53, %v1955_v53  ;;  %s2096_s22 = scalar_lea.hbm %s2176_s4, %s1170_s30  ;;  %s2100_s23 = scalar_lea.sflag [#allocation9], %s895_s14 }
 0x182   : > { %s1589_s12 = scalar_lea.vmem %s2091_s10, 128  ;;  %s1716_s13 = smov [#allocation8]  }
 0x183   : > { %v810_v11 = vadd.f32 %v809_v10, %v1953_v48  ;;  %v875_v12 = vadd.f32 %v874_v9, %v844_v7  ;;  %p1590_p11 = scmp.ne.s32.totalorder %s2091_s10, %s1589_s12  ;;  %s1593_s27 = sshll.u32 %s1716_s13, 4  ;;  %s1594_s27 = int_to_ptr.vmem [resolvable:$false] %s1593_s27 }
 0x184   : > { %s1595_s25 = scalar_lea.vmem %s1594_s27, 256  ;;  %p1596_p9 = scmp.lt.s32.totalorder %s2091_s10, %s1594_s27 }
 0x185   : > { %v876_v14 = vadd.f32 %v875_v12, %v845_v27  ;;  %v811_v34 = vadd.f32 %v810_v11, %v1959_v57  ;;  %p1591_p0 = pnand %p1590_p11, %p1840_p10  ;;  %p1597_p1 = scmp.lt.s32.totalorder %s1595_s25, %s1589_s12 }
 0x187   : > { %v812_v16 = vadd.f32 %v1951_v46, %v811_v34  ;;  %v877_v18 = vadd.f32 %v876_v14, %v846_v15  ;;  %v850_v46 = vmul.f32 %v1975_v17, %v1975_v17  ;;  %p1592_p5 = pneg %p1591_p0  ;;  %p1598_p2 = por %p1597_p1, %p1596_p9 }
 0x189   : > { %v878_v19 = vadd.f32 %v877_v18, %v847_v25  ;;  %v813_v48 = vadd.f32 %v1955_v53, %v812_v16  ;;  %p1599_p3 = pnand %p1598_p2, %p1592_p5 }
 0x18b   : > { %v814_v21 = vadd.f32 %v813_v48, %v1969_v8  ;;  %v879_v22 = vadd.f32 %v878_v19, %v848_v29 }
 0x18d   : > { %v880_v57 = vadd.f32 %v879_v22, %v849_v20  ;;  %v815_v23 = vadd.f32 %v814_v21, %v1975_v17 }
 0x18f   : > { %v816_v26 = vadd.f32 %v1967_v6, %v815_v23  ;;  %v881_v53 = vadd.f32 %v880_v57, %v850_v46  ;;  %v854_v6 = vmul.f32 %v1993_v45, %v1993_v45 }
 0x191   : > { %v882_v30 = vadd.f32 %v881_v53, %v851_v24  ;;  %v817_v8 = vadd.f32 %v1971_v13, %v816_v26  ;;  %v856_v13 = vmul.f32 %v1989_v41, %v1989_v41 }
 0x193   : > { %v818_v17 = vadd.f32 %v817_v8, %v1985_v36  ;;  %v883_v32 = vadd.f32 %v882_v30, %v852_v28 }
 0x195   : > { %v884_v35 = vadd.f32 %v883_v32, %v853_v31  ;;  %v819_v37 = vadd.f32 %v818_v17, %v1993_v45 }
 0x197   : > { %v820_v39 = vadd.f32 %v1983_v33, %v819_v37  ;;  %v885_v40 = vadd.f32 %v884_v35, %v854_v6 }
 0x199   : > { %v821_v36 = vadd.f32 %v1989_v41, %v820_v39  ;;  %v886_v42 = vadd.f32 %v885_v40, %v855_v38 }
 0x19b   : > { %v887_v43 = vadd.f32 %v886_v42, %v856_v13  ;;  %823 = vst [vmem:[%s258_s7] sm:$0xff] %v821_v36 }
 0x19c   : > { %1602 = shalt.err (!%p1599_p3)
}
 0x19d   : > { %s1603_s14 = scalar_lea.hbm %s2089_s6, 128  ;;  %s1607_s5 = scalar_lea.hbm %s2175_s3, 256 }
 0x19e   : > { %p1604_p7 = scmp.ne.s32.totalorder %s2089_s6, %s1603_s14  ;;  %p1608_p6 = scmp.lt.u32.totalorder %s2089_s6, %s2175_s3 }
 0x19f   : > { %p1609_p8 = scmp.lt.u32.totalorder %s1607_s5, %s1603_s14  ;;  %p1611_p11 = scmp.lt.u32.totalorder %s1603_s14, %s2089_s6 }
 0x1a0   : > { %p1605_p13 = pnand %p1604_p7, %p1840_p10 }
 0x1a1   : > { %p1610_p12 = por %p1609_p8, %p1608_p6 }
 0x1a2   : > { %p1606_p4 = pneg %p1605_p13 }
 0x1a3   : > { %p1612_p0 = por %p1611_p11, %p1610_p12 }
 0x1a5   : > { %p1613_p5 = pnand %p1612_p0, %p1606_p4 }
 0x1a7   : > { %1616 = shalt.err (!%p1613_p5)
}
 0x1a8   : > { %1398 = dma.vmem_to_hbm [thread:$0]  (%p1840_p10), %s2091_s10, 128, %s2089_s6, %s2100_s23   ;;  %889 = vst [vmem:[%s2083_s9] sm:$0xff] %v887_v43 }
 0x1a9   : > { %s1617_s21 = scalar_lea.vmem %s2098_s11, 128  ;;  %s1717_s12 = smov [#allocation10]  }
 0x1aa   : > { %p1618_p9 = scmp.ne.s32.totalorder %s2098_s11, %s1617_s21  ;;  %s1621_s13 = sshll.u32 %s1717_s12, 4  ;;  %s1622_s13 = int_to_ptr.vmem [resolvable:$false] %s1621_s13 }
 0x1ab   : > { %s1623_s27 = scalar_lea.vmem %s1622_s13, 256  ;;  %p1624_p3 = scmp.lt.s32.totalorder %s2098_s11, %s1622_s13 }
 0x1ac   : > { %p1619_p1 = pnand %p1618_p9, %p1840_p10  ;;  %p1625_p7 = scmp.lt.s32.totalorder %s1623_s27, %s1617_s21 }
 0x1ae   : > { %p1620_p2 = pneg %p1619_p1  ;;  %p1626_p13 = por %p1625_p7, %p1624_p3 }
 0x1b0   : > { %p1627_p4 = pnand %p1626_p13, %p1620_p2 }
 0x1b2   : > { %1630 = shalt.err (!%p1627_p4)
}
 0x1b3   : > { %s1631_s10 = scalar_lea.hbm %s2096_s22, 128  ;;  %s1635_s25 = scalar_lea.hbm %s2176_s4, 256 }
 0x1b4   : > { %p1632_p6 = scmp.ne.s32.totalorder %s2096_s22, %s1631_s10  ;;  %p1636_p11 = scmp.lt.u32.totalorder %s2096_s22, %s2176_s4 }
 0x1b5   : > { %p1637_p0 = scmp.lt.u32.totalorder %s1635_s25, %s1631_s10  ;;  %p1639_p9 = scmp.lt.u32.totalorder %s1631_s10, %s2096_s22 }
 0x1b6   : > { %p1633_p8 = pnand %p1632_p6, %p1840_p10 }
 0x1b7   : > { %p1638_p5 = por %p1637_p0, %p1636_p11 }
 0x1b8   : > { %p1634_p12 = pneg %p1633_p8 }
 0x1b9   : > { %p1640_p1 = por %p1639_p9, %p1638_p5 }
 0x1bb   : > { %p1641_p2 = pnand %p1640_p1, %p1634_p12 }
 0x1bd   : > { %1644 = shalt.err (!%p1641_p2)
}
 0x1be   : > { %1399 = dma.vmem_to_hbm [thread:$0]  (%p1840_p10), %s2098_s11, 128, %s2096_s22, %s2100_s23  }
 0x1bf PF: > { %s956_s7 = sand.u32 1, %s1687_s15   ;;  %p2193_p3 = scmp.ne.s32.totalorder %s2182_s24, 0 }
 0x1c0   : > { %p2194_p7 = scmp.ge.s32.totalorder %s1707_s20, 2  ;;  %s957_s5 = scalar_lea.sflag [#allocation4], %s956_s7 }
 0x1c2   : > { %p1412_p13 = pnand %p2194_p7, %p2193_p3 }
 0x1c4   : > { %1678 = dma.done.wait (!%p1412_p13), %s957_s5, 2048  }
 0x1c5   : > { %1680 = vsyncadd (!%p1412_p13), %s957_s5, 4294965248  ;;  %s2195_s26 = sadd.s32 4294967294, %s1707_s20  }
 0x1c6   : > { %s965_s18 = sand.u32 1, %s2195_s26  }
 0x1c7   : > { %s966_s21 = scalar_lea.sflag [#allocation9], %s965_s18 }
 0x1c8   : > { %1682 = dma.done.wait (!%p1412_p13), %s966_s21, 256  }
 0x1c9   : > { %1684 = vsyncadd (!%p1412_p13), %s966_s21, 4294967040  ;;  %s25_s20 = sadd.s32 1, %s1707_s20   ;;  %s2196_s15 = smov %s1691_s16 }
 0x1ca   : > { %p22_p10 = scmp.ge.s32.totalorder %s25_s20, 4   ;;  %s2197_s16 = smov %s1695_s17 }
 0x1cb   : > { %s2198_s17 = smov %s1849_s8  ;;  %s2199_s18 = smov %s1703_s19 }
 0x1cc   : > { %s2200_s19 = smov %s2202_s29  ;;  %24 = sbr.rel (!%p22_p10) target bundleno = 9 (0x9), region = 113 }
 0x1d3   :  { %980 = vsyncpa [#allocation3], 1 }
 0x1d4   :  { %982 = vsyncpa [#allocation3 + $0x1], 1 }
 0x1d5   :  { %983 = vsyncpa [#allocation6], 1 }
 0x1d6   :  { %984 = vsyncpa [#allocation4], 1 }
 0x1d7   :  { %986 = vsyncpa [#allocation4 + $0x1], 1 }
 0x1d8   :  { %987 = vsyncpa [#allocation9], 1 }
 0x1d9   :  { %989 = vsyncpa [#allocation9 + $0x1], 1 }

</bundles_post_ra>
